<compile_context>
chip_gen: v5e
topology: v5e:2x2
jax: 0.10.0
libtpu: 0.0.40
codegen_flags: <defaults>
</compile_context>

<pallas_src>
import jax
import jax.numpy as jnp
from jax.experimental import pallas as pl
from jax.experimental.pallas import tpu as pltpu

_LANES = 128                          # TPU vreg lane width
_TILE_BYTES = 4 * 1024 * 1024         # ~4 MiB per block buffer (amortizes ~0.35 us/step)
_SUBLANE_MULT = 32                    # keeps f32/bf16/int8 sublane packing aligned
_PALLAS_MIN_BYTES = 16 * 1024 * 1024  # below this, XLA-fused plain JAX wins
_VMEM_LIMIT_BYTES = 48 * 1024 * 1024  # safe on v5e/v6e (128 MiB) and v7x (64 MiB) VMEM


# ---------------------------------------------------------------------------
# Pallas kernel: out = -grad_weight * g (elementwise, memory-bound)
# ---------------------------------------------------------------------------
def _neg_scale_kernel(gw_ref, g_ref, o_ref):
    # gw_ref: (1,) float32 scalar in SMEM; g_ref / o_ref: (tile_rows, 128) VMEM blocks.
    neg_gw = -gw_ref[0]  # negation on the 32-bit scalar path (sreg); huge slack there
    # Multiply in f32 (robust on v5e where the VPU has no bf16 path), cast to out dtype.
    o_ref[...] = (neg_gw * g_ref[...].astype(jnp.float32)).astype(o_ref.dtype)


def _pick_tile_rows(rows: int, itemsize: int) -> int:
    """Dtype-aware tile height; guarantees >= 2 grid steps for mid-size inputs."""
    base = (_TILE_BYTES // (_LANES * itemsize)) // _SUBLANE_MULT * _SUBLANE_MULT
    base = max(_SUBLANE_MULT, base)
    if rows <= 2 * _SUBLANE_MULT:
        # Tiny: one full-array block (full-dim block shape is always layout-legal).
        return rows
    # Split into at least 2 blocks so v7x's two TensorCores both get work,
    # but never exceed the ~4 MiB-per-buffer target.
    half = pl.cdiv(pl.cdiv(rows, 2), _SUBLANE_MULT) * _SUBLANE_MULT
    return min(base, half)


def _neg_scale_pallas(g, grad_weight):
    """Compute -grad_weight * g with a lane-dense, tiled Pallas TPU kernel.

    Requires g.size to be a multiple of 128 (enforced by the dispatcher).
    """
    orig_shape = g.shape
    n = g.size
    itemsize = g.dtype.itemsize
    rows = n // _LANES
    g2d = g.reshape(rows, _LANES)  # zero-copy lane-dense view; no padding, no slicing

    tile_rows = _pick_tile_rows(rows, itemsize)
    grid_rows = pl.cdiv(rows, tile_rows)  # partial last block -> masked stores (safe)

    # grad_weight stays float32 on the SMEM scalar path regardless of g's dtype.
    gw = jnp.asarray(grad_weight, dtype=jnp.float32).reshape(1)

    out2d = pl.pallas_call(
        _neg_scale_kernel,
        out_shape=jax.ShapeDtypeStruct(g2d.shape, g2d.dtype),
        grid=(grid_rows,),
        in_specs=[
            pl.BlockSpec(memory_space=pltpu.MemorySpace.SMEM),    # scalar grad_weight
            pl.BlockSpec((tile_rows, _LANES), lambda i: (i, 0)),  # cotangent tile
        ],
        out_specs=pl.BlockSpec((tile_rows, _LANES), lambda i: (i, 0)),
        input_output_aliases={1: 0},  # reuse g's HBM buffer for the output
        cost_estimate=pl.CostEstimate(
            flops=n, transcendentals=0, bytes_accessed=2 * n * itemsize),
        compiler_params=pltpu.CompilerParams(
            dimension_semantics=("parallel",),       # shards across v7x's 2 TCs
            vmem_limit_bytes=_VMEM_LIMIT_BYTES,
        ),
    )(gw, g2d)

    return out2d.reshape(orig_shape)


def _neg_scale(g, grad_weight):
    """Dispatch: Pallas for large lane-aligned cotangents, fused plain JAX otherwise."""
    nbytes = g.size * g.dtype.itemsize
    if g.size % _LANES == 0 and nbytes >= _PALLAS_MIN_BYTES:
        return _neg_scale_pallas(g, grad_weight)
    # Small / oddly-shaped tensors: let XLA fuse the scalar multiply into the
    # producer of g (no standalone HBM pass, no kernel-launch overhead).
    gw = jnp.asarray(grad_weight, dtype=jnp.float32)
    return (-gw * g.astype(jnp.float32)).astype(g.dtype)


# ---------------------------------------------------------------------------
# custom_vjp wiring: identity forward, reversed + scaled backward
# ---------------------------------------------------------------------------
@jax.custom_vjp
def gradient_reversal(x, grad_weight):
    # Forward is a pure identity: no Pallas copy, no extra HBM traffic.
    return x


def _grl_fwd(x, grad_weight):
    return x, grad_weight


def _grl_bwd(grad_weight, g):
    dx = _neg_scale(g, grad_weight)
    # grad wrt grad_weight is zero (PyTorch returns None for it).
    return (dx, jnp.zeros_like(jnp.asarray(grad_weight)))


gradient_reversal.defvjp(_grl_fwd, _grl_bwd)


class GradientReversalLayer:
    """JAX/Pallas port of the PyTorch GradientReversalLayer."""

    def __init__(self, grad_weight: float = 1.0) -> None:
        # registered buffer: scalar tensor, deterministic init
        self.grad_weight = jnp.asarray(grad_weight, dtype=jnp.float32)

    def __call__(self, inputs):
        return gradient_reversal(inputs, self.grad_weight)

    # TODO(synk): PyTorch's _GradientReverse.jvp is an empty stub (forward-mode AD
    # undefined); custom_vjp here likewise only defines reverse-mode.


# ---------------------------------------------------------------------------
# main
# ---------------------------------------------------------------------------
if __name__ == "__main__":
    key = jax.random.PRNGKey(0)
    k1, k2, k3, k4 = jax.random.split(key, 4)

    layer = GradientReversalLayer(grad_weight=2.5)

    # 1) Spec-sized input (2, 4, 16, 16): forward identity + backward sign/scale
    #    (small -> fused plain-JAX backward path through the custom_vjp).
    x = jax.random.normal(k1, (2, 4, 16, 16), dtype=jnp.float32)  # NCHW
    y = jax.block_until_ready(layer(x))
    assert y.shape == x.shape and y.dtype == x.dtype
    assert jnp.array_equal(y, x), "forward must be identity"

    g_small = jax.block_until_ready(jax.grad(lambda z: jnp.sum(layer(z)))(x))
    assert jnp.allclose(g_small, -2.5 * jnp.ones_like(x)), "backward must be -lambda * g"

    # 2) Run the Pallas backward kernel directly on the spec-sized cotangent
    #    (single lane-dense (16, 128) block).
    ct = jax.random.normal(k2, (2, 4, 16, 16), dtype=jnp.float32)
    out = jax.block_until_ready(_neg_scale_pallas(ct, layer.grad_weight))
    assert jnp.allclose(out, -2.5 * ct, rtol=1e-6, atol=1e-6), "Pallas kernel mismatch"

    # 3) Mid-size f32 cotangent (64, 128, 128) = 4 MiB: exercises the >=2-step
    #    "parallel" grid (two 2 MiB blocks) and output aliasing.
    ct_mid = jax.random.normal(k3, (64, 128, 128), dtype=jnp.float32)
    out_mid = jax.block_until_ready(_neg_scale_pallas(ct_mid, layer.grad_weight))
    assert jnp.allclose(out_mid, -2.5 * ct_mid, rtol=1e-5, atol=1e-5), "tiled f32 mismatch"

    # 4) bfloat16 cotangent: float32 SMEM scalar + in-kernel f32 math, bf16 blocks.
    ct_bf16 = jax.random.normal(k4, (64, 128, 128), dtype=jnp.float32).astype(jnp.bfloat16)
    out_bf16 = jax.block_until_ready(_neg_scale_pallas(ct_bf16, layer.grad_weight))
    ref_bf16 = (-2.5 * ct_bf16.astype(jnp.float32)).astype(jnp.bfloat16)
    assert jnp.allclose(out_bf16.astype(jnp.float32), ref_bf16.astype(jnp.float32),
                        rtol=1e-2, atol=1e-2), "bf16 Pallas kernel mismatch"

    # 5) Large activation (256, 128, 128) f32 = 16 MiB: crosses the dispatch
    #    threshold, so the full custom_vjp backward routes through the Pallas kernel
    #    with a 4-step parallel grid of 4 MiB tiles.
    xl = jax.random.normal(jax.random.PRNGKey(1), (256, 128, 128), dtype=jnp.float32)
    cl = jax.random.normal(jax.random.PRNGKey(2), (256, 128, 128), dtype=jnp.float32)
    gl = jax.block_until_ready(jax.grad(lambda z: jnp.vdot(layer(z), cl))(xl))
    assert jnp.allclose(gl, -2.5 * cl, rtol=1e-5, atol=1e-5), "large backward mismatch"

    print("KERNEL_OK")
</pallas_src>

<mosaic_0001>
module attributes {stable_mosaic.version = 11 : i64} {
  func.func @_neg_scale_kernel(%arg0: i32, %arg1: memref<1xf32, #tpu.memory_space<smem>>, %arg2: memref<16x128xf32, #tpu.memory_space<vmem>>, %arg3: memref<16x128xf32, #tpu.memory_space<vmem>>) attributes {dimension_semantics = [#tpu.dimension_semantics<parallel>], iteration_bounds = array<i64: 1>, scalar_prefetch = 0 : i64, scratch_operands = 0 : i64, tpu.core_type = #tpu.core_type<tc>, window_params = [{transform_indices = @transform_0, window_bounds = array<i64: 1>}, {transform_indices = @transform_1, window_bounds = array<i64: 16, 128>}, {transform_indices = @transform_2, window_bounds = array<i64: 16, 128>}]} {
    %c0 = arith.constant 0 : index
    %0 = memref.load %arg1[%c0] : memref<1xf32, #tpu.memory_space<smem>>
    %cst = arith.constant 0.000000e+00 : f32
    %1 = arith.subf %cst, %0 : f32
    %c0_0 = arith.constant 0 : index
    %c0_1 = arith.constant 0 : index
    %2 = vector.load %arg2[%c0_0, %c0_1] : memref<16x128xf32, #tpu.memory_space<vmem>>, vector<16x128xf32>
    %3 = vector.broadcast %1 : f32 to vector<16x128xf32>
    %4 = arith.mulf %3, %2 : vector<16x128xf32>
    %c0_2 = arith.constant 0 : index
    %c0_3 = arith.constant 0 : index
    %5 = vector.load %arg3[%c0_2, %c0_3] : memref<16x128xf32, #tpu.memory_space<vmem>>, vector<16x128xf32>
    tpu.vector_store %arg3[%c0_2, %c0_3], %4 {strides = array<i32>} : memref<16x128xf32, #tpu.memory_space<vmem>>, vector<16x128xf32>,
    return
  }
  func.func @transform_0(%arg0: i32) -> i32 {
    %c0_i32 = arith.constant 0 : i32
    %c0_i32_0 = arith.constant 0 : i32
    return %c0_i32 : i32
  }
  func.func @transform_1(%arg0: i32) -> (i32, i32) {
    %c0_i32 = arith.constant 0 : i32
    %c0_i32_0 = arith.constant 0 : i32
    return %arg0, %c0_i32 : i32, i32
  }
  func.func @transform_2(%arg0: i32) -> (i32, i32) {
    %c0_i32 = arith.constant 0 : i32
    %c0_i32_0 = arith.constant 0 : i32
    return %arg0, %c0_i32 : i32, i32
  }
}

</mosaic_0001>

<bundles_post_ra>
// kernel: tpu_custom_call.1
= control target key start
LH: loop header
LB: loop body
LE: loop exit
PB: predicated region body
PF: predicated region fallthrough
CT: control target
= control target key end

     0   :  { %8 = vsyncpa [#allocation4], 0  ;;  %s141_s0 = inlined_call_operand.<no memory space> [shape: f32[1], index: 0, kind: input, shape index: {}]   ;;  %s142_s1 = inlined_call_operand.hbm [shape: f32[16,128], index: 1, kind: input, shape index: {}, may-alias: {1,2}]   ;;  %s143_s2 = inlined_call_operand.hbm [shape: f32[16,128], index: 2, kind: output, shape index: {}, may-alias: {1,2}]  }
   0x1   :  { %9 = vsyncpa [#allocation5], 0  ;;  %s16_s11 = sshll.u32 %s142_s1, 4  ;;  %s113_s12 = smov [#allocation3]   ;;  %s17_s11 = int_to_ptr.hbm [resolvable:$true] %s16_s11 }
   0x2   :  { %s18_s13 = sshll.u32 %s113_s12, 4  ;;  %s114_s14 = smov 128   ;;  %s19_s13 = int_to_ptr.vmem [resolvable:$true] %s18_s13 }
   0x3   :  { %s115_s15 = smov 8  }
   0x4   :  { %24 = dma.hbm_to_vmem [thread:$0]  %s17_s11, 256, %s19_s13, [#allocation4], %s114_s14, %s114_s14, %s115_s15  }
   0x5   :  { %109 = dma.done.wait [#allocation4], 256  }
   0x6   :  { %110 = vsyncadd [#allocation4], 4294967040  ;;  %s30_s18 = ssub.f32 0.0, %s141_s0  ;;  %s116_s19 = smov [#allocation6]   ;;  %v31_v1 = vld [vmem:[#allocation3] sm:$0xff]  ;;  %v32_v2 = vld [vmem:[#allocation3 + $0x8] sm:$0xff] }
   0x7   :  { %s42_s20 = sshll.u32 %s116_s19, 4  ;;  %s44_s1 = sshll.u32 %s143_s2, 4  ;;  %s43_s20 = int_to_ptr.vmem [resolvable:$true] %s42_s20  ;;  %s45_s1 = int_to_ptr.hbm [resolvable:$true] %s44_s1 }
   0x8   :  { %v33_v0 = vstv %s30_s18 }
   0x9   :  { %v34_v3 = vmul.f32 %v33_v0, %v31_v1  ;;  %v35_v4 = vmul.f32 %v33_v0, %v32_v2 }
   0xb   :  { %36 = vst [vmem:[#allocation6] sm:$0xff] %v34_v3 }
   0xc   :  { %37 = vst [vmem:[#allocation6 + $0x8] sm:$0xff] %v35_v4 }
   0xd   :  { %50 = dma.vmem_to_hbm [thread:$0]  %s43_s20, 256, %s45_s1, [#allocation5], %s114_s14, %s114_s14, %s115_s15  }
   0xe   :  { %111 = dma.done.wait [#allocation5], 256  }
   0xf   :  { %112 = vsyncadd [#allocation5], 4294967040 }
  0x10   :  { %55 = vsyncpa [#allocation4], 1 }
  0x11   :  { %56 = vsyncpa [#allocation5], 1 }

</bundles_post_ra>
